<compile_context>
chip_gen: v5e
topology: v5e:2x2
jax: 0.10.0
libtpu: 0.0.40
codegen_flags: <defaults>
</compile_context>

<pallas_src>
import jax
import jax.numpy as jnp
from jax import lax
from jax.experimental import pallas as pl
from jax.experimental.pallas import tpu as pltpu


def _vq_kernel(z_ref, en2_ref, esq_ref, et_ref, zq_ref, idx_ref, sse_ref):
    # z_ref  : (D, TN)    input tile, spatial positions on lanes
    # en2_ref: (n_e, D)   -2 * codebook (f32, or bf16 for the fast path)
    # esq_ref: (n_e, 1)   ||e_k||^2 (f32)
    # et_ref : (D, n_e)   codebook^T (f32, for the one-hot gather)
    # zq_ref : (D, TN)    quantized output tile
    # idx_ref: (1, TN)    int32 argmin indices (lane-dense)
    # sse_ref: (1, TN)    per-column sum over D of (zq - z)^2 (lane-dense)
    z = z_ref[...].astype(jnp.float32)        # (D, TN)
    en2 = en2_ref[...]                        # (n_e, D)
    e_sq = esq_ref[...].astype(jnp.float32)   # (n_e, 1)
    e_t = et_ref[...].astype(jnp.float32)     # (D, n_e)
    n_e = en2.shape[0]

    # Argmin-relevant distance term: score = ||e_k||^2 - 2 e_k . z_j.
    # (||z||^2 is constant per column and cannot change the argmin.)
    cross = lax.dot_general(en2, z.astype(en2.dtype), (((1,), (0,)), ((), ())),
                            preferred_element_type=jnp.float32)   # (n_e, TN)
    score = cross + e_sq                                           # (n_e, TN)

    # First-occurrence argmin over the sublane axis (matches torch.argmin /
    # jnp.argmin): min-reduce, then min-reduce a masked iota.
    iota = lax.broadcasted_iota(jnp.int32, score.shape, 0)
    min_s = jnp.min(score, axis=0, keepdims=True)                  # (1, TN)
    masked = jnp.where(score <= min_s, iota, n_e)
    idx = jnp.min(masked, axis=0, keepdims=True)                   # (1, TN)

    # Gather code vectors with a one-hot MXU matmul (contraction depth n_e),
    # kept in f32 so gathered codes match the codebook to f32 accuracy.
    onehot = (iota == idx).astype(jnp.float32)                     # (n_e, TN)
    zq = lax.dot_general(e_t, onehot, (((1,), (0,)), ((), ())),
                         preferred_element_type=jnp.float32)       # (D, TN)

    zq_ref[...] = zq.astype(zq_ref.dtype)
    idx_ref[...] = idx
    diff = zq - z
    sse_ref[...] = jnp.sum(diff * diff, axis=0, keepdims=True)     # (1, TN)


def _round_up(x, m):
    return ((x + m - 1) // m) * m


def _est_vmem_bytes(n_e, d, tile_hw):
    # (n_e, TN) f32/i32 intermediates: score, iota, masked, onehot.
    interm = 4 * n_e * tile_hw * 4
    # Double-buffered (D, TN) in/out blocks plus the two (1, TN) outputs.
    io = 2 * (2 * d * tile_hw * 4) + 2 * (2 * tile_hw * 4)
    return interm + io + (2 << 20)   # codebook + headroom


def vector_quantizer_forward(z, embedding_weight, beta, *,
                             tile_hw=4096, distance_in_bf16=False):
    """Pallas forward of VectorQuantizer (remap=None, sane_index_shape=False,
    legacy=True).

    z: (B, C, H, W), C == vq_embed_dim.  embedding_weight: (n_e, C).
    Returns (z_q [NCHW], loss scalar, (None, None, min_encoding_indices)).
    """
    b, c, h, w = z.shape
    n_e, d = embedding_weight.shape
    assert c == d, "channel dim must equal vq_embed_dim"
    hw = h * w

    # NCHW -> (B, C, HW): a free reshape (no data movement); column order per
    # batch is (h, w), identical to the module's flattened-NHWC row order.
    z3 = z.reshape(b, c, hw).astype(jnp.float32)

    # ---- tile sizing -------------------------------------------------------
    tile_hw = int(tile_hw)
    assert tile_hw % 128 == 0, "tile_hw must be a multiple of 128"
    tile_hw = min(tile_hw, _round_up(hw, 128))
    # v7x megacore: keep >= 2 grid points whenever possible.
    if b * ((hw + tile_hw - 1) // tile_hw) < 2 and hw > 128:
        tile_hw = _round_up((hw + 1) // 2, 128)
    # Keep per-step VMEM well under v7x's 64 MiB physical VMEM.
    while _est_vmem_bytes(n_e, d, tile_hw) > (40 << 20) and tile_hw > 128:
        tile_hw = max(128, _round_up(tile_hw // 2, 128))
    vmem_limit = int(min(max(_est_vmem_bytes(n_e, d, tile_hw), 32 << 20),
                         48 << 20))

    hw_pad = (-hw) % tile_hw
    if hw_pad:
        z3 = jnp.pad(z3, ((0, 0), (0, 0), (0, hw_pad)))
    hw_total = hw + hw_pad
    num_hw_tiles = hw_total // tile_hw

    # ---- codebook-side precompute (hoisted out of the grid loop) -----------
    e = embedding_weight.astype(jnp.float32)
    dist_dtype = jnp.bfloat16 if distance_in_bf16 else jnp.float32
    e_neg2 = (-2.0 * e).astype(dist_dtype)                  # (n_e, D)
    e_sq = jnp.sum(e * e, axis=1, keepdims=True)            # (n_e, 1)
    e_t = e.T                                               # (D, n_e)

    zq3, idx3, sse3 = pl.pallas_call(
        _vq_kernel,
        out_shape=(
            jax.ShapeDtypeStruct((b, d, hw_total), jnp.float32),
            jax.ShapeDtypeStruct((b, 1, hw_total), jnp.int32),
            jax.ShapeDtypeStruct((b, 1, hw_total), jnp.float32),
        ),
        grid=(b, num_hw_tiles),
        in_specs=[
            pl.BlockSpec((pl.Squeezed(), d, tile_hw), lambda i, j: (i, 0, j)),
            pl.BlockSpec((n_e, d), lambda i, j: (0, 0)),
            pl.BlockSpec((n_e, 1), lambda i, j: (0, 0)),
            pl.BlockSpec((d, n_e), lambda i, j: (0, 0)),
        ],
        out_specs=(
            pl.BlockSpec((pl.Squeezed(), d, tile_hw), lambda i, j: (i, 0, j)),
            pl.BlockSpec((pl.Squeezed(), 1, tile_hw), lambda i, j: (i, 0, j)),
            pl.BlockSpec((pl.Squeezed(), 1, tile_hw), lambda i, j: (i, 0, j)),
        ),
        compiler_params=pltpu.CompilerParams(
            dimension_semantics=("parallel", "parallel"),
            vmem_limit_bytes=vmem_limit),
    )(z3, e_neg2, e_sq, e_t)

    min_encoding_indices = idx3[:, 0, :hw].reshape(-1)

    # legacy=True loss: beta*mean((zq.detach()-z)^2) + mean((zq-z.detach())^2);
    # both terms have the same forward value -> (1 + beta) * MSE.
    sse = jnp.sum(sse3[:, 0, :hw])
    mse = sse / jnp.float32(b * hw * d)
    loss = (1.0 + beta) * mse

    # Straight-through: z_q = z + (z_q - z).detach() == z_q numerically.
    # TODO(synk): the straight-through gradient estimator is a backward-pass
    # construct; forward values are reproduced exactly here.
    z_q = zq3[:, :, :hw].reshape(b, c, h, w)

    perplexity = None
    min_encodings = None
    return z_q, loss, (perplexity, min_encodings, min_encoding_indices)


def _reference_forward(z, embedding_weight, beta):
    """Pure-JAX reference mirroring the PyTorch module (forward values)."""
    b, c, h, w = z.shape
    zp = jnp.transpose(z, (0, 2, 3, 1)).astype(jnp.float32)
    zf = zp.reshape(-1, c)
    e = embedding_weight.astype(jnp.float32)
    cross = jnp.dot(zf, e.T, precision=lax.Precision.HIGHEST)
    d2 = (jnp.sum(zf ** 2, axis=1, keepdims=True) - 2.0 * cross
          + jnp.sum(e ** 2, axis=1)[None, :])
    idx = jnp.argmin(d2, axis=1)
    zq = e[idx].reshape(zp.shape)
    loss = (1.0 + beta) * jnp.mean((zq - zp) ** 2)
    zq = jnp.transpose(zq, (0, 3, 1, 2))
    return zq, loss, idx


if __name__ == "__main__":
    # Module hyper-parameters (synthetic, deterministic init).
    n_e = 128            # codebook size
    vq_embed_dim = 4     # embedding dim == input channels
    beta = 0.25

    key = jax.random.PRNGKey(0)
    k_emb, k_z = jax.random.split(key)

    # nn.Embedding weight ~ U(-1/n_e, 1/n_e)
    embedding_weight = jax.random.uniform(
        k_emb, (n_e, vq_embed_dim), dtype=jnp.float32,
        minval=-1.0 / n_e, maxval=1.0 / n_e)

    # Input z in NCHW, matching the PyTorch convention.
    z = jax.random.normal(k_z, (2, vq_embed_dim, 16, 16), dtype=jnp.float32)

    z_q, loss, (perplexity, min_encodings, indices) = jax.block_until_ready(
        vector_quantizer_forward(z, embedding_weight, beta))

    # Correctness vs the pure-JAX reference (f32 distance path).
    zq_ref, loss_ref, idx_ref = _reference_forward(z, embedding_weight, beta)
    assert z_q.shape == z.shape and z_q.dtype == jnp.float32
    assert indices.shape == (z.shape[0] * z.shape[2] * z.shape[3],)
    assert jnp.allclose(z_q, zq_ref, atol=1e-5, rtol=1e-5)
    assert jnp.allclose(loss, loss_ref, atol=1e-6, rtol=1e-5)
    assert jnp.all(indices == idx_ref.astype(jnp.int32))

    # Fast path: bf16 distance matmul. Near-tie argmins may flip, so only the
    # loss is checked (loosely) here.
    z_q16, loss16, _ = jax.block_until_ready(
        vector_quantizer_forward(z, embedding_weight, beta,
                                 distance_in_bf16=True))
    assert z_q16.shape == z.shape
    assert jnp.allclose(loss16, loss_ref, rtol=1e-2, atol=1e-3)

    print("KERNEL_OK")
</pallas_src>

<mosaic_0001>
module attributes {stable_mosaic.version = 11 : i64} {
  func.func @_vq_kernel(%arg0: i32, %arg1: i32, %arg2: memref<1x4x256xf32, #tpu.memory_space<vmem>>, %arg3: memref<128x4xf32, #tpu.memory_space<vmem>>, %arg4: memref<128x1xf32, #tpu.memory_space<vmem>>, %arg5: memref<4x128xf32, #tpu.memory_space<vmem>>, %arg6: memref<1x4x256xf32, #tpu.memory_space<vmem>>, %arg7: memref<1x1x256xi32, #tpu.memory_space<vmem>>, %arg8: memref<1x1x256xf32, #tpu.memory_space<vmem>>) attributes {dimension_semantics = [#tpu.dimension_semantics<parallel>, #tpu.dimension_semantics<parallel>], iteration_bounds = array<i64: 2, 1>, scalar_prefetch = 0 : i64, scratch_operands = 0 : i64, tpu.core_type = #tpu.core_type<tc>, window_params = [{transform_indices = @transform_0, window_bounds = array<i64: 1, 4, 256>}, {pipeline_mode = #tpu.pipeline_mode<synchronous>, transform_indices = @transform_1, window_bounds = array<i64: 128, 4>}, {pipeline_mode = #tpu.pipeline_mode<synchronous>, transform_indices = @transform_2, window_bounds = array<i64: 128, 1>}, {pipeline_mode = #tpu.pipeline_mode<synchronous>, transform_indices = @transform_3, window_bounds = array<i64: 4, 128>}, {transform_indices = @transform_4, window_bounds = array<i64: 1, 4, 256>}, {transform_indices = @transform_5, window_bounds = array<i64: 1, 1, 256>}, {transform_indices = @transform_6, window_bounds = array<i64: 1, 1, 256>}]} {
    %c0 = arith.constant 0 : index
    %c0_0 = arith.constant 0 : index
    %c0_1 = arith.constant 0 : index
    %0 = vector.load %arg2[%c0, %c0_0, %c0_1] : memref<1x4x256xf32, #tpu.memory_space<vmem>>, vector<1x4x256xf32>
    %1 = vector.shape_cast %0 : vector<1x4x256xf32> to vector<4x256xf32>
    %c0_2 = arith.constant 0 : index
    %c0_3 = arith.constant 0 : index
    %2 = vector.load %arg3[%c0_2, %c0_3] : memref<128x4xf32, #tpu.memory_space<vmem>>, vector<128x4xf32>
    %c0_4 = arith.constant 0 : index
    %c0_5 = arith.constant 0 : index
    %3 = vector.load %arg4[%c0_4, %c0_5] : memref<128x1xf32, #tpu.memory_space<vmem>>, vector<128x1xf32>
    %c0_6 = arith.constant 0 : index
    %c0_7 = arith.constant 0 : index
    %4 = vector.load %arg5[%c0_6, %c0_7] : memref<4x128xf32, #tpu.memory_space<vmem>>, vector<4x128xf32>
    %cst = arith.constant dense<0.000000e+00> : vector<128x256xf32>
    %5 = tpu.matmul %2, %1, %cst {dimension_numbers = #tpu.dot_dimension_numbers<[1], [0], [0], [1], [0, 0, 1, 1], [], []>} : vector<128x4xf32>, vector<4x256xf32>, vector<128x256xf32> -> vector<128x256xf32>
    %6 = vector.broadcast %3 : vector<128x1xf32> to vector<128x256xf32>
    %7 = arith.addf %5, %6 : vector<128x256xf32>
    %8 = tpu.iota {dimensions = array<i32: 0>} : vector<128x256xi32>
    %cst_8 = arith.constant dense<0x7F800000> : vector<256xf32>
    %9 = vector.multi_reduction <minimumf>, %7, %cst_8 [0] : vector<128x256xf32> to vector<256xf32>
    %10 = vector.shape_cast %9 : vector<256xf32> to vector<1x256xf32>
    %11 = vector.broadcast %10 : vector<1x256xf32> to vector<128x256xf32>
    %12 = arith.cmpf ole, %7, %11 : vector<128x256xf32>
    %c128_i32 = arith.constant 128 : i32
    %13 = vector.broadcast %c128_i32 : i32 to vector<128x256xi32>
    %14 = arith.select %12, %8, %13 : vector<128x256xi1>, vector<128x256xi32>
    %cst_9 = arith.constant dense<2147483647> : vector<256xi32>
    %15 = vector.multi_reduction <minsi>, %14, %cst_9 [0] : vector<128x256xi32> to vector<256xi32>
    %16 = vector.shape_cast %15 : vector<256xi32> to vector<1x256xi32>
    %17 = vector.broadcast %16 : vector<1x256xi32> to vector<128x256xi32>
    %18 = arith.cmpi eq, %8, %17 : vector<128x256xi32>
    %19 = arith.extui %18 : vector<128x256xi1> to vector<128x256xi32>
    %20 = arith.sitofp %19 : vector<128x256xi32> to vector<128x256xf32>
    %cst_10 = arith.constant dense<0.000000e+00> : vector<4x256xf32>
    %21 = tpu.matmul %4, %20, %cst_10 {dimension_numbers = #tpu.dot_dimension_numbers<[1], [0], [0], [1], [0, 0, 1, 1], [], []>} : vector<4x128xf32>, vector<128x256xf32>, vector<4x256xf32> -> vector<4x256xf32>
    %c0_11 = arith.constant 0 : index
    %c0_12 = arith.constant 0 : index
    %c0_13 = arith.constant 0 : index
    %22 = vector.load %arg6[%c0_11, %c0_12, %c0_13] : memref<1x4x256xf32, #tpu.memory_space<vmem>>, vector<1x4x256xf32>
    %23 = vector.shape_cast %22 : vector<1x4x256xf32> to vector<4x256xf32>
    %24 = vector.shape_cast %21 : vector<4x256xf32> to vector<1x4x256xf32>
    tpu.vector_store %arg6[%c0_11, %c0_12, %c0_13], %24 {strides = array<i32>} : memref<1x4x256xf32, #tpu.memory_space<vmem>>, vector<1x4x256xf32>,
    %c0_14 = arith.constant 0 : index
    %c0_15 = arith.constant 0 : index
    %c0_16 = arith.constant 0 : index
    %25 = vector.load %arg7[%c0_14, %c0_15, %c0_16] : memref<1x1x256xi32, #tpu.memory_space<vmem>>, vector<1x1x256xi32>
    %26 = vector.shape_cast %25 : vector<1x1x256xi32> to vector<1x256xi32>
    %27 = vector.shape_cast %16 : vector<1x256xi32> to vector<1x1x256xi32>
    tpu.vector_store %arg7[%c0_14, %c0_15, %c0_16], %27 {strides = array<i32>} : memref<1x1x256xi32, #tpu.memory_space<vmem>>, vector<1x1x256xi32>,
    %28 = arith.subf %21, %1 : vector<4x256xf32>
    %29 = arith.mulf %28, %28 : vector<4x256xf32>
    %cst_17 = arith.constant dense<0.000000e+00> : vector<256xf32>
    %30 = vector.multi_reduction <add>, %29, %cst_17 [0] : vector<4x256xf32> to vector<256xf32>
    %31 = vector.shape_cast %30 : vector<256xf32> to vector<1x256xf32>
    %c0_18 = arith.constant 0 : index
    %c0_19 = arith.constant 0 : index
    %c0_20 = arith.constant 0 : index
    %32 = vector.load %arg8[%c0_18, %c0_19, %c0_20] : memref<1x1x256xf32, #tpu.memory_space<vmem>>, vector<1x1x256xf32>
    %33 = vector.shape_cast %32 : vector<1x1x256xf32> to vector<1x256xf32>
    %34 = vector.shape_cast %31 : vector<1x256xf32> to vector<1x1x256xf32>
    tpu.vector_store %arg8[%c0_18, %c0_19, %c0_20], %34 {strides = array<i32>} : memref<1x1x256xf32, #tpu.memory_space<vmem>>, vector<1x1x256xf32>,
    return
  }
  func.func @transform_0(%arg0: i32, %arg1: i32) -> (i32, i32, i32) {
    %c0_i32 = arith.constant 0 : i32
    %c0_i32_0 = arith.constant 0 : i32
    return %arg0, %c0_i32, %arg1 : i32, i32, i32
  }
  func.func @transform_1(%arg0: i32, %arg1: i32) -> (i32, i32) {
    %c0_i32 = arith.constant 0 : i32
    %c0_i32_0 = arith.constant 0 : i32
    %c0_i32_1 = arith.constant 0 : i32
    return %c0_i32, %c0_i32_0 : i32, i32
  }
  func.func @transform_2(%arg0: i32, %arg1: i32) -> (i32, i32) {
    %c0_i32 = arith.constant 0 : i32
    %c0_i32_0 = arith.constant 0 : i32
    %c0_i32_1 = arith.constant 0 : i32
    return %c0_i32, %c0_i32_0 : i32, i32
  }
  func.func @transform_3(%arg0: i32, %arg1: i32) -> (i32, i32) {
    %c0_i32 = arith.constant 0 : i32
    %c0_i32_0 = arith.constant 0 : i32
    %c0_i32_1 = arith.constant 0 : i32
    return %c0_i32, %c0_i32_0 : i32, i32
  }
  func.func @transform_4(%arg0: i32, %arg1: i32) -> (i32, i32, i32) {
    %c0_i32 = arith.constant 0 : i32
    %c0_i32_0 = arith.constant 0 : i32
    return %arg0, %c0_i32, %arg1 : i32, i32, i32
  }
  func.func @transform_5(%arg0: i32, %arg1: i32) -> (i32, i32, i32) {
    %c0_i32 = arith.constant 0 : i32
    %c0_i32_0 = arith.constant 0 : i32
    return %arg0, %c0_i32, %arg1 : i32, i32, i32
  }
  func.func @transform_6(%arg0: i32, %arg1: i32) -> (i32, i32, i32) {
    %c0_i32 = arith.constant 0 : i32
    %c0_i32_0 = arith.constant 0 : i32
    return %arg0, %c0_i32, %arg1 : i32, i32, i32
  }
}

</mosaic_0001>

<bundles_post_ra>
// kernel: tpu_custom_call.1
= control target key start
LH: loop header
LB: loop body
LE: loop exit
PB: predicated region body
PF: predicated region fallthrough
CT: control target
= control target key end

     0   :  { %s2261_s0 = inlined_call_operand.vmem [shape: f32[2,4,256], index: 0, kind: input, shape index: {}]   ;;  %s2262_s1 = inlined_call_operand.vmem [shape: f32[128,4], index: 1, kind: input, shape index: {}]   ;;  %s2263_s2 = inlined_call_operand.vmem [shape: f32[128,1], index: 2, kind: input, shape index: {}]   ;;  %s2264_s3 = inlined_call_operand.vmem [shape: f32[4,128], index: 3, kind: input, shape index: {}]   ;;  %s2265_s4 = inlined_call_operand.hbm [shape: f32[2,4,256], index: 4, kind: output, shape index: {0}]   ;;  %s2266_s5 = inlined_call_operand.hbm [shape: s32[2,1,256], index: 5, kind: output, shape index: {1}]   ;;  %s2267_s6 = inlined_call_operand.hbm [shape: f32[2,1,256], index: 6, kind: output, shape index: {2}]  }
   0x1   :  { %2270 = sst [smem:[#allocation9_spill]] %s2261_s0 }
   0x2   :  { %2271 = sst [smem:[#allocation10_spill]] %s2262_s1 }
   0x3   :  { %2272 = sst [smem:[#allocation11_spill]] %s2263_s2 }
   0x4   :  { %12 = vsyncpa [#allocation3], 0 }
   0x5   :  { %14 = vsyncpa [#allocation3 + $0x1], 0 }
   0x6   :  { %15 = vsyncpa [#allocation5], 0 }
   0x7   :  { %17 = vsyncpa [#allocation5 + $0x1], 0  ;;  %s1559_s21 = smov 0   ;;  %s1561_s22 = smov 0  }
   0x8   :  { %s1563_s23 = smov 0   ;;  %s1565_s24 = smov 0  }
   0x9   :  { %s1567_s25 = smov 0   ;;  %s1569_s26 = smov 0  }
   0xa LB: > { %s1191_s27 = sadd.s32 4294967295, %s1520_s26   ;;  %s2268_s28 = sadd.s32 4294967294, %s1520_s26   ;;  %s1520_s26 = sphi %s1569_s26, %s23_s26   ;;  %s1516_s25 = sphi %s1567_s25, %s2286_s25   ;;  %s1512_s24 = sphi %s1565_s24, %s2285_s24   ;;  %s1508_s23 = sphi %s1563_s23, %s2284_s23   ;;  %s1504_s22 = sphi %s1561_s22, %s2283_s22   ;;  %s1500_s21 = sphi %s1559_s21, %s2282_s21  }
   0xb   : > { %s35_s29 = sadd.s32 1, %s1516_s25  ;;  %s135_s30 = sadd.s32 1, %s1508_s23 }
   0xc   : > { %p37_p0 = scmp.ge.s32.totalorder %s35_s29, 2  ;;  %p145_p1 = scmp.ne.s32.totalorder %s1508_s23, %s1504_s22 }
   0xd   : > { %p146_p2 = scmp.eq.s32.totalorder %s1191_s27, 1  ;;  %p151_p3 = scmp.ne.s32.totalorder %s1504_s22, %s1500_s21 }
   0xe   : > { %s2288_s29 = smov (%p37_p0, %s35_s29), 0  ;;  %p152_p5 = scmp.eq.s32.totalorder %s2268_s28, 1 }
   0xf   : > { %p1601_p4 = por %p146_p2, %p145_p1  ;;  %s130_s8 = ssub.s32 %s1516_s25, %s2288_s29 }
  0x10   : > { %p1195_p6 = scmp.ge.s32.totalorder %s1520_s26, 1  ;;  %p133_p7 = scmp.eq.s32.totalorder %s130_s8, 0 }
  0x11   : > { %p1610_p8 = por %p152_p5, %p151_p3  ;;  %p248_p9 = scmp.lt.s32.totalorder %s1520_s26, 3 }
  0x12   : > { %s1616_s10 = scalar_select %p133_p7, %s1508_s23, %s135_s30  }
  0x13   : > { %p249_p10 = pnand %p1195_p6, %p248_p9 }
  0x14   : > { %p293_p11 = scmp.lt.s32.totalorder (!%p249_p10), %s1512_s24, 1  ;;  %s2275_s2 = sld [smem:[#allocation11_spill]] (!%p249_p10) }
  0x15   : > { %252 = sbr.rel (%p249_p10) target bundleno = 491 (0x1eb), region = 36  ;;  %s2276_s0 = sld [smem:[#allocation9_spill]] (!%p249_p10) }
  0x16   : > { %s2277_s1 = sld [smem:[#allocation10_spill]] (!%p249_p10)  ;;  %s2056_s20 = sand.u32 (!%p249_p10), 1, %s1504_s22  }
  0x17   : > { %s2269_s30 = sshll.u32 (!%p249_p10), %s2056_s20, 1  ;;  %s2174_s14 = sand.u32 (!%p249_p10), 1, %s1191_s27  }
  0x18   : > { %s2098_s8 = scalar_lea.vmem (!%p249_p10), [#allocation4], %s2269_s30  ;;  %s993_s11 = scalar_lea.sflag (!%p249_p10), [#allocation5], %s2174_s14 }
  0x19   : > { %s1029_s18 = sshll.u32 (!%p249_p10), %s2098_s8, 4  ;;  %s1030_s18 = int_to_ptr.vmem [resolvable:$true] %s1029_s18 }
  0x1a   : > { %v1522_v0 = vmov 0   ;;  %v322_v1 = vld [vmem:[%s2275_s2] sm:$0xff]  ;;  %s294_s13 = scalar_select %p293_p11, %s1512_s24, 1  ;;  %v324_v2 = vld [vmem:[%s2275_s2 + $0x10] sm:$0xff]  ;;  %v323_v4 = vld [vmem:[%s2275_s2 + $0x8] sm:$0xff]  ;;  %vm472_vm0 = vcmask 1043456  }
  0x1b   : > { %1379 = vset.pattern.permute.xlu0 %v1522_v0  ;;  %1380 = vset.pattern.permute.xlu1 %v1522_v0  ;;  %v325_v5 = vld [vmem:[%s2275_s2 + $0x18] sm:$0xff]  ;;  %vm423_vm1 = vcmask 31744   ;;  %v328_v11 = vld [vmem:[%s2275_s2 + $0x30] sm:$0xff]  ;;  %v331_v15 = vld [vmem:[%s2275_s2 + $0x48] sm:$0xff] }
  0x1c   : > { %341 = vperm.xlu0 %1379, %v322_v1   ;;  %1381 = vset.pattern.permute.xlu2 %v1522_v0  ;;  %s1308_s16 = sshll.u32 %s294_s13, 3  ;;  %v306_v6 = vld [vmem:[%s2277_s1] sm:$0xff]  ;;  %v316_v7 = vld [vmem:[%s2277_s1 + $0x50] sm:$0xff]  ;;  %v1646_v10 = vld [vmem:[%s2277_s1 + $0x48] sm:$0xff]  ;;  %s1304_s13 = sshll.u32 %s1512_s24, 1 }
  0x1d   : > { %351 = vperm.xlu1 %1380, %v324_v2   ;;  %s300_s19 = scalar_lea.vmem %s2276_s0, %s1308_s16  ;;  %v329_v12 = vld [vmem:[%s2275_s2 + $0x38] sm:$0xff]  ;;  %v307_v13 = vld [vmem:[%s2277_s1 + $0x8] sm:$0xff]  ;;  %v332_v16 = vld [vmem:[%s2275_s2 + $0x50] sm:$0xff]  ;;  %s1027_s17 = scalar_lea.hbm %s2266_s5, %s1304_s13 }
  0x1e   : > { %v305_v3 = vld [vmem:[%s300_s19] sm:$0xff]  ;;  %v317_v14 = vld [vmem:[%s2277_s1 + $0x58] sm:$0xff]  ;;  %v308_v18 = vld [vmem:[%s2277_s1 + $0x10] sm:$0xff]  ;;  %s1031_s19 = sshll.u32 %s1027_s17, 4  ;;  %s1402_s0 = scalar_lea.hbm %s2266_s5, 4  ;;  %s1032_s19 = int_to_ptr.hbm [resolvable:$true] %s1031_s19 }
  0x1f   : > { %420 = vst [vmem:[#allocation1] ss:$2 sm:$0xff] %v305_v3  ;;  %v326_v17 = vld [vmem:[%s2275_s2 + $0x20] sm:$0xff]  ;;  %v335_v21 = vld [vmem:[%s2275_s2 + $0x68] sm:$0xff]  ;;  %v309_v23 = vld [vmem:[%s2277_s1 + $0x18] sm:$0xff]  ;;  %s1396_s12 = sshra.s32 %s1032_s19, 4  ;;  %s1397_s12 = int_to_ptr.hbm [resolvable:$true] %s1396_s12 }
  0x20   : > { %361 = vperm.xlu2 %1381, %v326_v17   ;;  %v318_v19 = vld [vmem:[%s2277_s1 + $0x60] sm:$0xff]  ;;  %v327_v22 = vld [vmem:[%s2275_s2 + $0x28] sm:$0xff]  ;;  %v337_v25 = vld [vmem:[%s2275_s2 + $0x78] sm:$0xff]  ;;  %s1398_s28 = scalar_lea.hbm %s1397_s12, 2  ;;  %p1403_p1 = scmp.lt.s32.totalorder %s1397_s12, %s2266_s5 }
  0x21   : > { %v334_v20 = vld [vmem:[%s2275_s2 + $0x60] sm:$0xff]  ;;  %v319_v24 = vld [vmem:[%s2277_s1 + $0x68] sm:$0xff]  ;;  %v320_v28 = vld [vmem:[%s2277_s1 + $0x70] sm:$0xff]  ;;  %p1399_p12 = scmp.ne.s32.totalorder %s1397_s12, %s1398_s28  ;;  %p1404_p2 = scmp.lt.s32.totalorder %s1402_s0, %s1398_s28 }
  0x22   : > { %v330_v26 = vld [vmem:[%s2275_s2 + $0x40] sm:$0xff]  ;;  %v333_v29 = vld [vmem:[%s2275_s2 + $0x58] sm:$0xff]  ;;  %v311_v30 = vld [vmem:[%s2277_s1 + $0x28] sm:$0xff] }
  0x23   : > { %v310_v27 = vld [vmem:[%s2277_s1 + $0x20] sm:$0xff]  ;;  %v321_v31 = vld [vmem:[%s2277_s1 + $0x78] sm:$0xff]  ;;  %v336_v32 = vld [vmem:[%s2275_s2 + $0x70] sm:$0xff]  ;;  %p1400_p13 = pnand %p1399_p12, %p1601_p4  ;;  %p1405_p3 = por %p1404_p2, %p1403_p1 }
  0x24   : > { %346 = vperm.xlu0 %1379, %v323_v4   ;;  %v312_v33 = vld [vmem:[%s2277_s1 + $0x30] sm:$0xff]  ;;  %v313_v34 = vld [vmem:[%s2277_s1 + $0x38] sm:$0xff]  ;;  %v314_v35 = vld [vmem:[%s2277_s1 + $0x40] sm:$0xff] }
  0x25   : > { %356 = vperm.xlu1 %1380, %v325_v5   ;;  %p1401_p0 = pneg %p1400_p13 }
  0x26   : > { %v421_v8 = vld.sshfl [vmem:[#allocation1] sm:$0xff pattern:$0x75316420]  ;;  %v422_v9 = vld.sshfl [vmem:[#allocation1 + $0x8] sm:$0xff pattern:$0x75316420] }
  0x27   : > { %1201 = vmatpush.msk.msra.mxu0 %vm472_vm0, %v421_v8  ;;  %1310 = vmatpush.msk.msra.mxu2 %vm472_vm0, %v421_v8  ;;  %958 = vst [vmem:[#allocation1] ss:$2 sm:$0xff] %v305_v3  ;;  %p1406_p5 = pnand %p1405_p3, %p1401_p0 }
  0x28   : > { %1218 = vmatpush.msk.msra.mxu1 %vm472_vm0, %v422_v9  ;;  %1311 = vmatpush.msk.msra.mxu3 %vm472_vm0, %v422_v9 }
  0x29   : > { %1202 = vmatmul.msk.f32.vlgmr.msra.gmra.mxu0 %vm423_vm1, %v306_v6  ;;  %1212 = vmatmul.msk.f32.vlgmr.msra.gmra.mxu2 %vm423_vm1, %v316_v7 }
  0x2a   : > { %1219 = vmatmul.msk.f32.vlgmr.msra.gmra.mxu1 %vm423_vm1, %v306_v6  ;;  %1228 = vmatmul.msk.f32.vlgmr.msra.gmra.mxu3 %vm423_vm1, %v1646_v10 }
  0x2b   : > { %366 = vperm.xlu2 %1381, %v327_v22  }
  0x2c   : > { %371 = vperm.xlu0 %1379, %v328_v11  }
  0x2d   : > { %376 = vperm.xlu1 %1380, %v329_v12  }
  0x31   : > { %1203 = vmatmul.msk.f32.gmra.mxu0 %vm423_vm1, %v307_v13  ;;  %1213 = vmatmul.msk.f32.gmra.mxu2 %vm423_vm1, %v317_v14 }
  0x32   : > { %1220 = vmatmul.msk.f32.gmra.mxu1 %vm423_vm1, %v307_v13  ;;  %1229 = vmatmul.msk.f32.gmra.mxu3 %vm423_vm1, %v316_v7 }
  0x33   : > { %381 = vperm.xlu2 %1381, %v330_v26  }
  0x34   : > { %386 = vperm.xlu0 %1379, %v331_v15  }
  0x35   : > { %391 = vperm.xlu1 %1380, %v332_v16  }
  0x39   : > { %1204 = vmatmul.msk.f32.gmra.mxu0 %vm423_vm1, %v308_v18  ;;  %1214 = vmatmul.msk.f32.gmra.mxu2 %vm423_vm1, %v318_v19 }
  0x3a   : > { %1221 = vmatmul.msk.f32.gmra.mxu1 %vm423_vm1, %v308_v18  ;;  %1230 = vmatmul.msk.f32.gmra.mxu3 %vm423_vm1, %v317_v14 }
  0x3b   : > { %396 = vperm.xlu2 %1381, %v333_v29  }
  0x3c   : > { %401 = vperm.xlu0 %1379, %v334_v20  }
  0x3d   : > { %406 = vperm.xlu1 %1380, %v335_v21  }
  0x41   : > { %1205 = vmatmul.msk.f32.gmra.mxu0 %vm423_vm1, %v309_v23  ;;  %1215 = vmatmul.msk.f32.gmra.mxu2 %vm423_vm1, %v319_v24 }
  0x42   : > { %1222 = vmatmul.msk.f32.gmra.mxu1 %vm423_vm1, %v309_v23  ;;  %1231 = vmatmul.msk.f32.gmra.mxu3 %vm423_vm1, %v318_v19 }
  0x43   : > { %411 = vperm.xlu2 %1381, %v336_v32  }
  0x44   : > { %416 = vperm.xlu0 %1379, %v337_v25  }
  0x49   : > { %1206 = vmatmul.msk.f32.gmra.mxu0 %vm423_vm1, %v310_v27  ;;  %1216 = vmatmul.msk.f32.gmra.mxu2 %vm423_vm1, %v320_v28 }
  0x4a   : > { %1223 = vmatmul.msk.f32.gmra.mxu1 %vm423_vm1, %v310_v27  ;;  %1232 = vmatmul.msk.f32.gmra.mxu3 %vm423_vm1, %v319_v24 }
  0x51   : > { %1207 = vmatmul.msk.f32.gmra.mxu0 %vm423_vm1, %v311_v30  ;;  %1217 = vmatmul.msk.f32.gmra.mxu2 %vm423_vm1, %v321_v31 }
  0x52   : > { %1224 = vmatmul.msk.f32.gmra.mxu1 %vm423_vm1, %v311_v30  ;;  %1233 = vmatmul.msk.f32.gmra.mxu3 %vm423_vm1, %v320_v28 }
  0x59   : > { %1208 = vmatmul.msk.f32.gmra.mxu0 %vm423_vm1, %v312_v33 }
  0x5a   : > { %1225 = vmatmul.msk.f32.gmra.mxu1 %vm423_vm1, %v312_v33  ;;  %1234 = vmatmul.msk.f32.gmra.mxu3 %vm423_vm1, %v321_v31 }
  0x61   : > { %1209 = vmatmul.msk.f32.gmra.mxu0 %vm423_vm1, %v313_v34 }
  0x62   : > { %1226 = vmatmul.msk.f32.gmra.mxu1 %vm423_vm1, %v313_v34 }
  0x69   : > { %1210 = vmatmul.msk.f32.gmra.mxu0 %vm423_vm1, %v314_v35 }
  0x6a   : > { %1227 = vmatmul.msk.f32.gmra.mxu1 %vm423_vm1, %v314_v35 }
  0x71   : > { %1211 = vmatmul.msk.f32.gmra.mxu0 %vm423_vm1, %v1646_v10 }
  0x7a   : > { %v362_v50 = vpop.permute.xlu2 %361 }
  0x85   : > { %v367_v57 = vpop.permute.xlu2 %366 }
  0x8d   : > { %v382_v3 = vpop.permute.xlu2 %381 }
  0x8e   : > { %v342_v44 = vpop.permute.xlu0 %341 }
  0x8f   : > { %v352_v46 = vpop.permute.xlu1 %351 }
  0x95   : > { %v397_v23 = vpop.permute.xlu2 %396 }
  0x96   : > { %v347_v51 = vpop.permute.xlu0 %346 }
  0x97   : > { %v357_v54 = vpop.permute.xlu1 %356 }
  0x9e   : > { %v372_v59 = vpop.permute.xlu0 %371 }
  0x9f   : > { %v377_v61 = vpop.permute.xlu1 %376 }
  0xa6   : > { %v494_v36 = vpop.f32.mrf.mxu0  ;;  %v1769_v2 = vpop.permute.xlu0 %386 }
  0xa7   : > { %v559_v37 = vpop.f32.mrf.mxu1  ;;  %v392_v7 = vpop.permute.xlu1 %391  ;;  %v1796_v21 = vadd.f32 %v494_v36, %v342_v44 }
  0xa8   : > { %v1788_v17 = vadd.f32 %v559_v37, %v342_v44 }
  0xac   : > { %v1763_v48 = vpop.f32.mrf.mxu2 }
  0xad   : > { %v586_v39 = vpop.f32.mrf.mxu3 }
  0xae   : > { %v1759_v38 = vpop.f32.mrf.mxu0  ;;  %v1791_v18 = vadd.f32 %v586_v39, %v1769_v2  ;;  %v402_v22 = vpop.permute.xlu0 %401 }
  0xaf   : > { %v562_v40 = vpop.f32.mrf.mxu1  ;;  %v407_v35 = vpop.permute.xlu1 %406  ;;  %v1822_v44 = vadd.f32 %v1759_v38, %v347_v51 }
  0xb0   : > { %v1773_v5 = vadd.f32 %v562_v40, %v347_v51 }
  0xb4   : > { %v1765_v55 = vpop.f32.mrf.mxu2 }
  0xb5   : > { %v1761_v43 = vpop.f32.mrf.mxu3 }
  0xb6   : > { %v500_v41 = vpop.f32.mrf.mxu0 }
  0xb7   : > { %v565_v42 = vpop.f32.mrf.mxu1  ;;  %v1786_v15 = vadd.f32 %v500_v41, %v352_v46 }
  0xb8   : > { %v1781_v12 = vadd.f32 %v565_v42, %v352_v46 }
  0xb9   : > { %v624_v28 = vmin.f32 %v1796_v21, %v1786_v15 }
  0xba   : > { %v645_v25 = vmin.f32 %v1788_v17, %v1781_v12 }
  0xbc   : > { %v1767_v62 = vpop.f32.mrf.mxu2 }
  0xbd   : > { %v592_v49 = vpop.f32.mrf.mxu3 }
  0xbe   : > { %v503_v45 = vpop.f32.mrf.mxu0  ;;  %v1809_v30 = vadd.f32 %v592_v49, %v397_v23 }
  0xbf   : > { %v568_v47 = vpop.f32.mrf.mxu1  ;;  %v1812_v33 = vadd.f32 %v503_v45, %v357_v54 }
  0xc0   : > { %v1771_v4 = vadd.f32 %v568_v47, %v357_v54  ;;  %v1828_v47 = vadd.f32 %v1761_v43, %v392_v7  ;;  %v1843_v43 = vadd.f32 %v1763_v48, %v392_v7 }
  0xc2   : > { %v646_v8 = vmin.f32 %v1773_v5, %v1771_v4 }
  0xc4   : > { %v1779_v9 = vpop.f32.mrf.mxu2 }
  0xc5   : > { %v595_v56 = vpop.f32.mrf.mxu3 }
  0xc6   : > { %v506_v52 = vpop.f32.mrf.mxu0  ;;  %v1838_v51 = vadd.f32 %v595_v56, %v402_v22 }
  0xc7   : > { %v571_v53 = vpop.f32.mrf.mxu1  ;;  %v1798_v24 = vadd.f32 %v506_v52, %v362_v50  ;;  %v625_v52 = vmin.f32 %v1822_v44, %v1812_v33 }
  0xc8   : > { %v1793_v19 = vadd.f32 %v571_v53, %v362_v50 }
  0xc9   : > { %v626_v34 = vmin.f32 %v624_v28, %v1798_v24 }
  0xca   : > { %v647_v31 = vmin.f32 %v645_v25, %v1793_v19 }
  0xcc   : > { %v536_v39 = vpop.f32.mrf.mxu2 }
  0xcd   : > { %v598_v0 = vpop.f32.mrf.mxu3 }
  0xce   : > { %v509_v58 = vpop.f32.mrf.mxu0  ;;  %v1830_v49 = vadd.f32 %v598_v0, %v407_v35 }
  0xcf   : > { %v574_v60 = vpop.f32.mrf.mxu1  ;;  %v1824_v46 = vadd.f32 %v509_v58, %v367_v57 }
  0xd0   : > { %v1775_v6 = vadd.f32 %v574_v60, %v367_v57  ;;  %v412_v60 = vpop.permute.xlu2 %411 }
  0xd2   : > { %v648_v13 = vmin.f32 %v646_v8, %v1775_v6 }
  0xd5   : > { %v601_v16 = vpop.f32.mrf.mxu3 }
  0xd6   : > { %v512_v63 = vpop.f32.mrf.mxu0  ;;  %v1846_v0 = vadd.f32 %v601_v16, %v412_v60 }
  0xd7   : > { %v577_v1 = vpop.f32.mrf.mxu1  ;;  %v1807_v29 = vadd.f32 %v512_v63, %v372_v59  ;;  %v627_v63 = vmin.f32 %v625_v52, %v1824_v46 }
  0xd8   : > { %v1802_v26 = vadd.f32 %v577_v1, %v372_v59  ;;  %v417_v59 = vpop.permute.xlu0 %416 }
  0xd9   : > { %v628_v45 = vmin.f32 %v626_v34, %v1807_v29 }
  0xda   : > { %v649_v40 = vmin.f32 %v647_v31, %v1802_v26 }
  0xdd   : > { %v604_v53 = vpop.f32.mrf.mxu3 }
  0xde   : > { %v515_v10 = vpop.f32.mrf.mxu0  ;;  %v1848_v1 = vadd.f32 %v604_v53, %v417_v59 }
  0xdf   : > { %v580_v11 = vpop.f32.mrf.mxu1  ;;  %v1835_v54 = vadd.f32 %v515_v10, %v377_v61 }
  0xe0   : > { %v1784_v14 = vadd.f32 %v580_v11, %v377_v61  ;;  %v1859_v11 = vadd.f32 %v1767_v62, %v402_v22 }
  0xe1   : > { %v629_v56 = vmin.f32 %v627_v63, %v1835_v54 }
  0xe2   : > { %v650_v20 = vmin.f32 %v648_v13, %v1784_v14  ;;  %v1862_v13 = vadd.f32 %v1765_v55, %v397_v23  ;;  %v607_v55 = vlaneseq }
  0xe4   : > { %v652_v27 = vmin.f32 %v650_v20, %v1791_v18  ;;  %v539_v20 = vpop.f32.mrf.mxu2 }
  0xe5   : > { %v1872_v34 = vadd.f32 %v539_v20, %v417_v59 }
  0xe6   : > { %v518_v32 = vpop.f32.mrf.mxu0  ;;  %v654_v41 = vmin.f32 %v652_v27, %v1809_v30  ;;  %v1866_v27 = vadd.f32 %v1779_v9, %v407_v35  ;;  %v1878_v35 = vshrl.u32 %v607_v55, 7 }
  0xe7   : > { %v1815_v36 = vadd.f32 %v518_v32, %v382_v3  ;;  %v583_v37 = vpop.f32.mrf.mxu1  ;;  %v1870_v32 = vadd.f32 %v536_v39, %v412_v60 }
  0xe8   : > { %v1819_v42 = vadd.f32 %v583_v37, %v382_v3  ;;  %v656_v57 = vmin.f32 %v654_v41, %v1830_v49  ;;  %v1881_v52 = vadd.s32 16, %v1878_v35  ;;  %v1899_v60 = vadd.s32 80, %v1878_v35 }
  0xe9   : > { %v630_v38 = vmin.f32 %v628_v45, %v1815_v36  ;;  %v1902_v63 = vadd.s32 96, %v1878_v35 }
  0xea   : > { %v651_v50 = vmin.f32 %v649_v40, %v1819_v42  ;;  %v658_v48 = vmin.f32 %v656_v57, %v1848_v1  ;;  %v1889_v57 = vadd.s32 48, %v1878_v35 }
  0xeb   : > { %v632_v8 = vmin.f32 %v630_v38, %v1843_v43  ;;  %v1886_v38 = vadd.s32 32, %v1878_v35 }
  0xec   : > { %v653_v58 = vmin.f32 %v651_v50, %v1828_v47 }
  0xee   : > { %v655_v61 = vmin.f32 %v653_v58, %v1838_v51  ;;  %v521_v3 = vpop.f32.mrf.mxu0  ;;  %v1892_v58 = vadd.s32 64, %v1878_v35 }
  0xef   : > { %v1854_v10 = vadd.f32 %v521_v3, %v1769_v2  ;;  %v634_v2 = vmin.f32 %v632_v8, %v1859_v11  ;;  %v1908_v3 = vadd.s32 8, %v1878_v35  ;;  %v1918_v8 = vadd.s32 40, %v1878_v35 }
  0xf0   : > { %v657_v7 = vmin.f32 %v655_v61, %v1846_v0  ;;  %v1905_v61 = vadd.s32 112, %v1878_v35 }
  0xf1   : > { %v631_v16 = vmin.f32 %v629_v56, %v1854_v10  ;;  %v636_v23 = vmin.f32 %v634_v2, %v1870_v32  ;;  %v1915_v56 = vadd.s32 24, %v1878_v35 }
  0xf2   : > { %v659_v25 = vmin.f32 %v657_v7, %v658_v48  ;;  %v1921_v48 = vadd.s32 56, %v1878_v35  ;;  %v1924_v7 = vadd.s32 72, %v1878_v35 }
  0xf3   : > { %v633_v28 = vmin.f32 %v631_v16, %v1862_v13  ;;  %v1927_v16 = vadd.s32 88, %v1878_v35 }
  0xf4   : > { %v660_v31 = vrot.slane %v659_v25, 4 }
  0xf5   : > { %v635_v62 = vmin.f32 %v633_v28, %v1866_v27 }
  0xf6   : > { %v661_v22 = vmin.f32 %v659_v25, %v660_v31  ;;  %v1946_v31 = vadd.s32 104, %v1878_v35 }
  0xf7   : > { %v637_v37 = vmin.f32 %v635_v62, %v1872_v34 }
  0xf8   : > { %v662_v40 = vrot.slane %v661_v22, 2 }
  0xf9   : > { %v638_v9 = vmin.f32 %v636_v23, %v637_v37 }
  0xfa   : > { %v663_v41 = vmin.f32 %v661_v22, %v662_v40 }
  0xfb   : > { %v639_v45 = vrot.slane %v638_v9, 4 }
  0xfc   : > { %v664_v50 = vrot.slane %v663_v41, 1 }
  0xfd   : > { %v640_v39 = vmin.f32 %v638_v9, %v639_v45 }
  0xfe   : > { %v1883_v53 = vmin.f32 %v663_v41, %v664_v50 }
  0xff   : > { %v641_v59 = vrot.slane %v640_v39, 2 }
 0x100   : > { %vm667_vm2 = vcmp.le.f32.partialorder %v1788_v17, %v1883_v53  ;;  %vm671_vm3 = vcmp.le.f32.partialorder %v1781_v12, %v1883_v53  ;;  %vm675_vm4 = vcmp.le.f32.partialorder %v1793_v19, %v1883_v53  ;;  %vm679_vm5 = vcmp.le.f32.partialorder %v1802_v26, %v1883_v53 }
 0x101   : > { %v699_v17 = vsel %vm667_vm2, %v1878_v35, 128  ;;  %v703_v12 = vsel %vm671_vm3, %v1881_v52, 128  ;;  %vm683_vm6 = vcmp.le.f32.partialorder %v1819_v42, %v1883_v53  ;;  %v642_v19 = vmin.f32 %v640_v39, %v641_v59 }
 0x102   : > { %vm769_vm7 = vcmp.lt.s32.totalorder %v699_v17, %v703_v12  ;;  %v707_v20 = vsel %vm675_vm4, %v1886_v38, 128  ;;  %vm669_vm8 = vcmp.le.f32.partialorder %v1773_v5, %v1883_v53  ;;  %vm673_vm9 = vcmp.le.f32.partialorder %v1771_v4, %v1883_v53 }
 0x103   : > { %v770_v25 = vsel %vm769_vm7, %v699_v17, %v703_v12  ;;  %vm687_vm10 = vcmp.le.f32.partialorder %v1828_v47, %v1883_v53  ;;  %vm691_vm11 = vcmp.le.f32.partialorder %v1838_v51, %v1883_v53  ;;  %v643_v26 = vrot.slane %v642_v19, 1 }
 0x104   : > { %vm773_vm12 = vcmp.lt.s32.totalorder %v770_v25, %v707_v20  ;;  %vm695_vm13 = vcmp.le.f32.partialorder %v1846_v0, %v1883_v53  ;;  %v711_v2 = vsel %vm679_vm5, %v1889_v57, 128  ;;  %v701_v4 = vsel %vm669_vm8, %v1908_v3, 128 }
 0x105   : > { %v774_v28 = vsel %vm773_vm12, %v770_v25, %v707_v20  ;;  %v1948_v5 = vmin.f32 %v642_v19, %v643_v26  ;;  %v705_v47 = vsel %vm673_vm9, %v1915_v56, 128  ;;  %v715_v51 = vsel %vm683_vm6, %v1892_v58, 128 }
 0x106   : > { %vm777_vm14 = vcmp.lt.s32.totalorder %v774_v28, %v711_v2  ;;  %v719_v62 = vsel %vm687_vm10, %v1899_v60, 128  ;;  %v723_v22 = vsel %vm691_vm11, %v1902_v63, 128  ;;  %vm677_vm3 = vcmp.le.f32.partialorder %v1775_v6, %v1883_v53 }
 0x107   : > { %v778_v23 = vsel %vm777_vm14, %v774_v28, %v711_v2  ;;  %vm668_vm1 = vcmp.le.f32.partialorder %v1822_v44, %v1948_v5  ;;  %vm672_vm2 = vcmp.le.f32.partialorder %v1812_v33, %v1948_v5  ;;  %v727_v42 = vsel %vm695_vm13, %v1905_v61, 128 }
 0x108   : > { %vm781_vm15 = vcmp.lt.s32.totalorder %v778_v23, %v715_v51  ;;  %vm681_vm4 = vcmp.le.f32.partialorder %v1784_v14, %v1883_v53  ;;  %vm771_vm5 = vcmp.lt.s32.totalorder %v701_v4, %v705_v47  ;;  %vm676_vm7 = vcmp.le.f32.partialorder %v1824_v46, %v1948_v5 }
 0x109   : > { %v782_v37 = vsel %vm781_vm15, %v778_v23, %v715_v51  ;;  %v700_v44 = vsel %vm668_vm1, %v1908_v3, 128  ;;  %v704_v33 = vsel %vm672_vm2, %v1915_v56, 128  ;;  %vm685_vm8 = vcmp.le.f32.partialorder %v1791_v18, %v1883_v53 }
 0x10a   : > { %vm785_vm6 = vcmp.lt.s32.totalorder %v782_v37, %v719_v62  ;;  %vm689_vm9 = vcmp.le.f32.partialorder %v1809_v30, %v1883_v53  ;;  %v709_v6 = vsel %vm677_vm3, %v1918_v8, 128  ;;  %vm680_vm10 = vcmp.le.f32.partialorder %v1835_v54, %v1948_v5 }
 0x10b   : > { %v786_v40 = vsel %vm785_vm6, %v782_v37, %v719_v62  ;;  %vm684_vm11 = vcmp.le.f32.partialorder %v1854_v10, %v1948_v5  ;;  %v713_v14 = vsel %vm681_vm4, %v1921_v48, 128  ;;  %vm732_vm12 = vcmp.lt.s32.totalorder %v700_v44, %v704_v33 }
 0x10c   : > { %vm789_vm13 = vcmp.lt.s32.totalorder %v786_v40, %v723_v22  ;;  %v708_v46 = vsel %vm676_vm7, %v1918_v8, 128  ;;  %v733_v0 = vsel %vm732_vm12, %v700_v44, %v704_v33  ;;  %v772_v18 = vsel %vm771_vm5, %v701_v4, %v705_v47 }
 0x10d   : > { %v717_v9 = vsel %vm685_vm8, %v1924_v7, 128  ;;  %v721_v30 = vsel %vm689_vm9, %v1927_v16, 128  ;;  %vm736_vm14 = vcmp.lt.s32.totalorder %v733_v0, %v708_v46  ;;  %vm775_vm15 = vcmp.lt.s32.totalorder %v772_v18, %v709_v6 }
 0x10e   : > { %vm688_vm1 = vcmp.le.f32.partialorder %v1862_v13, %v1948_v5  ;;  %v712_v54 = vsel %vm680_vm10, %v1921_v48, 128  ;;  %v737_v41 = vsel %vm736_vm14, %v733_v0, %v708_v46  ;;  %v776_v45 = vsel %vm775_vm15, %v772_v18, %v709_v6 }
 0x10f   : > { %v790_v50 = vsel %vm789_vm13, %v786_v40, %v723_v22  ;;  %v716_v39 = vsel %vm684_vm11, %v1924_v7, 128  ;;  %vm740_vm2 = vcmp.lt.s32.totalorder %v737_v41, %v712_v54  ;;  %vm779_vm3 = vcmp.lt.s32.totalorder %v776_v45, %v713_v14 }
 0x110   : > { %v741_v59 = vsel %vm740_vm2, %v737_v41, %v712_v54  ;;  %v780_v17 = vsel %vm779_vm3, %v776_v45, %v713_v14  ;;  %vm666_vm4 = vcmp.le.f32.partialorder %v1796_v21, %v1948_v5  ;;  %vm670_vm5 = vcmp.le.f32.partialorder %v1786_v15, %v1948_v5 }
 0x111   : > { %vm692_vm6 = vcmp.le.f32.partialorder %v1866_v27, %v1948_v5  ;;  %vm744_vm7 = vcmp.lt.s32.totalorder %v741_v59, %v716_v39  ;;  %vm783_vm8 = vcmp.lt.s32.totalorder %v780_v17, %v717_v9  ;;  %vm693_vm9 = vcmp.le.f32.partialorder %v1830_v49, %v1883_v53 }
 0x112   : > { %vm793_vm10 = vcmp.lt.s32.totalorder %v790_v50, %v727_v42  ;;  %v720_v10 = vsel %vm688_vm1, %v1927_v16, 128  ;;  %v745_v12 = vsel %vm744_vm7, %v741_v59, %v716_v39  ;;  %v784_v19 = vsel %vm783_vm8, %v780_v17, %v717_v9 }
 0x113   : > { %vm748_vm11 = vcmp.lt.s32.totalorder %v745_v12, %v720_v10  ;;  %vm787_vm12 = vcmp.lt.s32.totalorder %v784_v19, %v721_v30  ;;  %v698_v15 = vsel %vm666_vm4, %v1878_v35, 128  ;;  %v702_v21 = vsel %vm670_vm5, %v1881_v52, 128 }
 0x114   : > { %v2010_v27 = vadd.s32 120, %v1878_v35  ;;  %vm674_vm13 = vcmp.le.f32.partialorder %v1798_v24, %v1948_v5  ;;  %v794_v20 = vsel %vm793_vm10, %v790_v50, %v727_v42  ;;  %v724_v25 = vsel %vm692_vm6, %v1946_v31, 128 }
 0x115   : > { %v749_v26 = vsel %vm748_vm11, %v745_v12, %v720_v10  ;;  %vm697_vm14 = vcmp.le.f32.partialorder %v1848_v1, %v1883_v53  ;;  %vm678_vm15 = vcmp.le.f32.partialorder %v1807_v29, %v1948_v5  ;;  %v725_v13 = vsel %vm693_vm9, %v1946_v31, 128 }
 0x116   : > { %vm730_vm1 = vcmp.lt.s32.totalorder %v698_v15, %v702_v21  ;;  %v788_v2 = vsel %vm787_vm12, %v784_v19, %v721_v30  ;;  %vm682_vm2 = vcmp.le.f32.partialorder %v1815_v36, %v1948_v5  ;;  %v706_v24 = vsel %vm674_vm13, %v1886_v38, 128 }
 0x117   : > { %v731_v28 = vsel %vm730_vm1, %v698_v15, %v702_v21  ;;  %vm791_vm3 = vcmp.lt.s32.totalorder %v788_v2, %v725_v13  ;;  %vm752_vm4 = vcmp.lt.s32.totalorder %v749_v26, %v724_v25  ;;  %v729_v1 = vsel %vm697_vm14, %v2010_v27, 128 }
 0x118   : > { %vm734_vm5 = vcmp.lt.s32.totalorder %v731_v28, %v706_v24  ;;  %v792_v4 = vsel %vm791_vm3, %v788_v2, %v725_v13  ;;  %v710_v29 = vsel %vm678_vm15, %v1889_v57, 128  ;;  %vm686_vm7 = vcmp.le.f32.partialorder %v1843_v43, %v1948_v5 }
 0x119   : > { %v735_v47 = vsel %vm734_vm5, %v731_v28, %v706_v24  ;;  %vm795_vm6 = vcmp.lt.s32.totalorder %v792_v4, %v729_v1  ;;  %vm696_vm8 = vcmp.le.f32.partialorder %v1872_v34, %v1948_v5  ;;  %v753_v53 = vsel %vm752_vm4, %v749_v26, %v724_v25 }
 0x11a   : > { %vm738_vm9 = vcmp.lt.s32.totalorder %v735_v47, %v710_v29  ;;  %v796_v49 = vsel %vm795_vm6, %v792_v4, %v729_v1  ;;  %v714_v51 = vsel %vm682_vm2, %v1892_v58, 128  ;;  %vm690_vm11 = vcmp.le.f32.partialorder %v1859_v11, %v1948_v5 }
 0x11b   : > { %v739_v62 = vsel %vm738_vm9, %v735_v47, %v710_v29  ;;  %vm797_vm10 = vcmp.lt.s32.totalorder %v794_v20, %v796_v49  ;;  %v718_v43 = vsel %vm686_vm7, %v1899_v60, 128  ;;  %v728_v23 = vsel %vm696_vm8, %v2010_v27, 128 }
 0x11c   : > { %vm742_vm12 = vcmp.lt.s32.totalorder %v739_v62, %v714_v51  ;;  %v798_v22 = vsel %vm797_vm10, %v794_v20, %v796_v49  ;;  %vm694_vm13 = vcmp.le.f32.partialorder %v1870_v32, %v1948_v5  ;;  %vm756_vm15 = vcmp.lt.s32.totalorder %v753_v53, %v728_v23 }
 0x11d   : > { %v743_v34 = vsel %vm742_vm12, %v739_v62, %v714_v51  ;;  %v799_v42 = vrot.slane %v798_v22, 4  ;;  %v722_v36 = vsel %vm690_vm11, %v1902_v63, 128  ;;  %v726_v11 = vsel %vm694_vm13, %v1905_v61, 128 }
 0x11e   : > { %vm746_vm14 = vcmp.lt.s32.totalorder %v743_v34, %v718_v43  ;;  %v757_v40 = vsel %vm756_vm15, %v753_v53, %v728_v23  ;;  %v1523_v54 = vmov 1.0  }
 0x11f   : > { %v747_v37 = vsel %vm746_vm14, %v743_v34, %v718_v43  ;;  %vm800_vm1 = vcmp.lt.s32.totalorder %v798_v22, %v799_v42 }
 0x120   : > { %vm750_vm2 = vcmp.lt.s32.totalorder %v747_v37, %v722_v36  ;;  %v801_v44 = vsel %vm800_vm1, %v798_v22, %v799_v42 }
 0x121   : > { %v751_v33 = vsel %vm750_vm2, %v747_v37, %v722_v36  ;;  %v802_v6 = vrot.slane %v801_v44, 2  ;;  %vm951_vm2 = vcmask 1040384  }
 0x122   : > { %vm754_vm3 = vcmp.lt.s32.totalorder %v751_v33, %v726_v11 }
 0x123   : > { %v755_v14 = vsel %vm754_vm3, %v751_v33, %v726_v11  ;;  %vm803_vm4 = vcmp.lt.s32.totalorder %v801_v44, %v802_v6 }
 0x124   : > { %vm758_vm5 = vcmp.lt.s32.totalorder %v755_v14, %v757_v40  ;;  %v804_v46 = vsel %vm803_vm4, %v801_v44, %v802_v6  ;;  %vm2077_vm4 = vcmp.lt.s32.totalorder %v607_v55, 256 }
 0x125   : > { %v759_v0 = vsel %vm758_vm5, %v755_v14, %v757_v40  ;;  %v805_v32 = vrot.slane %v804_v46, 1 }
 0x126   : > { %v760_v5 = vrot.slane %v759_v0, 4 }
 0x127   : > { %vm806_vm6 = vcmp.lt.s32.totalorder %v804_v46, %v805_v32 }
 0x128   : > { %vm761_vm7 = vcmp.lt.s32.totalorder %v759_v0, %v760_v5  ;;  %v2044_v18 = vsel %vm806_vm6, %v804_v46, %v805_v32 }
 0x129   : > { %v762_v9 = vsel %vm761_vm7, %v759_v0, %v760_v5  ;;  %vm839_vm8 = vcmp.eq.s32.totalorder %v2010_v27, %v2044_v18  ;;  %vm837_vm9 = vcmp.eq.s32.totalorder %v1905_v61, %v2044_v18  ;;  %vm835_vm11 = vcmp.eq.s32.totalorder %v1946_v31, %v2044_v18 }
 0x12a   : > { %v763_v30 = vrot.slane %v762_v9, 2  ;;  %1283 = vmatpush.msk.msrb.mxu3 %vm839_vm8, %v1523_v54  ;;  %vm833_vm12 = vcmp.eq.s32.totalorder %v1902_v63, %v2044_v18  ;;  %vm831_vm14 = vcmp.eq.s32.totalorder %v1927_v16, %v2044_v18  ;;  %vm829_vm1 = vcmp.eq.s32.totalorder %v1899_v60, %v2044_v18 }
 0x12b   : > { %v950_v39 = vrot.slane %v2044_v18, 7  ;;  %vm827_vm5 = vcmp.eq.s32.totalorder %v1924_v7, %v2044_v18 }
 0x12c   : > { %vm764_vm10 = vcmp.lt.s32.totalorder %v762_v9, %v763_v30  ;;  %1284 = vmatpush.msk.msrb.mxu3 %vm837_vm9, %v1523_v54  ;;  %vm825_vm9 = vcmp.eq.s32.totalorder %v1892_v58, %v2044_v18 }
 0x12d   : > { %v765_v41 = vsel %vm764_vm10, %v762_v9, %v763_v30 }
 0x12e   : > { %v766_v45 = vrot.slane %v765_v41, 1  ;;  %1285 = vmatpush.msk.msrb.mxu3 %vm835_vm11, %v1523_v54  ;;  %vm823_vm11 = vcmp.eq.s32.totalorder %v1921_v48, %v2044_v18 }
 0x130   : > { %vm767_vm13 = vcmp.lt.s32.totalorder %v765_v41, %v766_v45  ;;  %1286 = vmatpush.msk.msrb.mxu3 %vm833_vm12, %v1523_v54 }
 0x131   : > { %v2061_v50 = vsel %vm767_vm13, %v765_v41, %v766_v45  ;;  %vm821_vm13 = vcmp.eq.s32.totalorder %v1889_v57, %v2044_v18 }
 0x132   : > { %vm838_vm15 = vcmp.eq.s32.totalorder %v2010_v27, %v2061_v50  ;;  %1287 = vmatpush.msk.msrb.mxu3 %vm831_vm14, %v1523_v54  ;;  %vm836_vm3 = vcmp.eq.s32.totalorder %v1905_v61, %v2061_v50  ;;  %vm812_vm6 = vcmp.eq.s32.totalorder %v1881_v52, %v2061_v50  ;;  %vm810_vm7 = vcmp.eq.s32.totalorder %v1908_v3, %v2061_v50 }
 0x133   : > { %1267 = vmatpush.msk.msrb.mxu2 %vm838_vm15, %v1523_v54  ;;  %vm834_vm8 = vcmp.eq.s32.totalorder %v1946_v31, %v2061_v50  ;;  %v952_v55 = vsel %vm951_vm2, %v2061_v50, %v950_v39  ;;  %vm832_vm10 = vcmp.eq.s32.totalorder %v1902_v63, %v2061_v50  ;;  %vm830_vm12 = vcmp.eq.s32.totalorder %v1927_v16, %v2061_v50 }
 0x134   : > { %1288 = vmatpush.msk.msrb.mxu3 %vm829_vm1, %v1523_v54  ;;  %957 = vst.msk [vmem:[%s2098_s8] sm:$0x3] %vm2077_vm4, %v952_v55  ;;  %vm828_vm14 = vcmp.eq.s32.totalorder %v1899_v60, %v2061_v50  ;;  %vm819_vm15 = vcmp.eq.s32.totalorder %v1918_v8, %v2044_v18  ;;  %vm826_vm1 = vcmp.eq.s32.totalorder %v1924_v7, %v2061_v50 }
 0x135   : > { %1268 = vmatpush.msk.msrb.mxu2 %vm836_vm3, %v1523_v54  ;;  %vm817_vm3 = vcmp.eq.s32.totalorder %v1886_v38, %v2044_v18 }
 0x136   : > { %1289 = vmatpush.msk.msrb.mxu3 %vm827_vm5, %v1523_v54  ;;  %vm824_vm5 = vcmp.eq.s32.totalorder %v1892_v58, %v2061_v50  ;;  %v338_v58 = vld [vmem:[%s2264_s3] sm:$0xf] }
 0x137   : > { %1269 = vmatpush.msk.msrb.mxu2 %vm834_vm8, %v1523_v54  ;;  %vm815_vm8 = vcmp.eq.s32.totalorder %v1915_v56, %v2044_v18 }
 0x138   : > { %1290 = vmatpush.msk.msrb.mxu3 %vm825_vm9, %v1523_v54  ;;  %vm822_vm9 = vcmp.eq.s32.totalorder %v1921_v48, %v2061_v50 }
 0x139   : > { %1270 = vmatpush.msk.msrb.mxu2 %vm832_vm10, %v1523_v54  ;;  %vm813_vm10 = vcmp.eq.s32.totalorder %v1881_v52, %v2044_v18 }
 0x13a   : > { %1291 = vmatpush.msk.msrb.mxu3 %vm823_vm11, %v1523_v54  ;;  %vm820_vm11 = vcmp.eq.s32.totalorder %v1889_v57, %v2061_v50 }
 0x13b   : > { %1271 = vmatpush.msk.msrb.mxu2 %vm830_vm12, %v1523_v54  ;;  %vm811_vm12 = vcmp.eq.s32.totalorder %v1908_v3, %v2044_v18 }
 0x13c   : > { %1292 = vmatpush.msk.msrb.mxu3 %vm821_vm13, %v1523_v54  ;;  %vm818_vm13 = vcmp.eq.s32.totalorder %v1918_v8, %v2061_v50 }
 0x13d   : > { %1272 = vmatpush.msk.msrb.mxu2 %vm828_vm14, %v1523_v54  ;;  %vm809_vm14 = vcmp.eq.s32.totalorder %v1878_v35, %v2044_v18 }
 0x13e   : > { %1293 = vmatpush.msk.msrb.mxu3 %vm819_vm15, %v1523_v54  ;;  %vm816_vm15 = vcmp.eq.s32.totalorder %v1886_v38, %v2061_v50 }
 0x13f   : > { %1273 = vmatpush.msk.msrb.mxu2 %vm826_vm1, %v1523_v54  ;;  %vm814_vm1 = vcmp.eq.s32.totalorder %v1915_v56, %v2061_v50 }
 0x140   : > { %1294 = vmatpush.msk.msrb.mxu3 %vm817_vm3, %v1523_v54  ;;  %vm808_vm3 = vcmp.eq.s32.totalorder %v1878_v35, %v2061_v50 }
 0x141   : > { %1274 = vmatpush.msk.msrb.mxu2 %vm824_vm5, %v1523_v54 }
 0x142   : > { %1295 = vmatpush.msk.msrb.mxu3 %vm815_vm8, %v1523_v54 }
 0x143   : > { %1275 = vmatpush.msk.msrb.mxu2 %vm822_vm9, %v1523_v54 }
 0x144   : > { %1296 = vmatpush.msk.msrb.mxu3 %vm813_vm10, %v1523_v54 }
 0x145   : > { %1276 = vmatpush.msk.msrb.mxu2 %vm820_vm11, %v1523_v54 }
 0x146   : > { %1297 = vmatpush.msk.msrb.mxu3 %vm811_vm12, %v1523_v54 }
 0x147   : > { %1277 = vmatpush.msk.msrb.mxu2 %vm818_vm13, %v1523_v54 }
 0x148   : > { %1298 = vmatpush.msk.msrb.mxu3 %vm809_vm14, %v1523_v54 }
 0x149   : > { %1278 = vmatpush.msk.msrb.mxu2 %vm816_vm15, %v1523_v54  ;;  %940 = vmatmul.f32.vlgmr.msrb.gmra.mxu3 %v338_v58 }
 0x14b   : > { %1279 = vmatpush.msk.msrb.mxu2 %vm814_vm1, %v1523_v54 }
 0x14d   : > { %1280 = vmatpush.msk.msrb.mxu2 %vm812_vm6, %v1523_v54 }
 0x14f   : > { %1281 = vmatpush.msk.msrb.mxu2 %vm810_vm7, %v1523_v54 }
 0x151   : > { %1282 = vmatpush.msk.msrb.mxu2 %vm808_vm3, %v1523_v54 }
 0x152   : > { %920 = vmatmul.f32.vlgmr.msrb.gmra.mxu2 %v338_v58 }
 0x153   : > { %1409 = shalt.err (!%p1406_p5)
}
 0x154   : > { %1313 = dma.vmem_to_hbm [thread:$0]  (%p1601_p4), %s1030_s18, 32, %s1032_s19, %s993_s11   ;;  %v960_v35 = vld.sshfl [vmem:[#allocation1 + $0x8] sm:$0xff pattern:$0x75316420] }
 0x155   : > { %s1309_s8 = sshll.u32 %s1512_s24, 3  ;;  %s1196_s30 = sshll.u32 %s2056_s20, 3  ;;  %v959_v3 = vld.sshfl [vmem:[#allocation1] sm:$0xff pattern:$0x75316420] }
 0x156   : > { %s1011_s0 = scalar_lea.hbm %s2265_s4, %s1309_s8  ;;  %s277_s2 = scalar_lea.vmem [#allocation2], %s1196_s30 }
 0x157   : > { %s1013_s28 = sshll.u32 %s277_s2, 4  ;;  %s1015_s16 = sshll.u32 %s1011_s0, 4  ;;  %s1014_s28 = int_to_ptr.vmem [resolvable:$true] %s1013_s28  ;;  %s1016_s16 = int_to_ptr.hbm [resolvable:$true] %s1015_s16 }
 0x158   : > { %s988_s17 = scalar_lea.sflag [#allocation3], %s2056_s20  ;;  %s1424_s18 = sshra.s32 %s1016_s16, 4  ;;  %s1425_s18 = int_to_ptr.hbm [resolvable:$true] %s1424_s18 }
 0x159   : > { %s1426_s19 = scalar_lea.hbm %s1425_s18, 8  ;;  %s1430_s8 = scalar_lea.hbm %s2265_s4, 16 }
 0x15a   : > { %p1427_p6 = scmp.ne.s32.totalorder %s1425_s18, %s1426_s19  ;;  %p1431_p10 = scmp.lt.s32.totalorder %s1425_s18, %s2265_s4 }
 0x15b   : > { %p1432_p11 = scmp.lt.s32.totalorder %s1430_s8, %s1426_s19 }
 0x15c   : > { %p1428_p7 = pnand %p1427_p6, %p1601_p4 }
 0x15d   : > { %p1433_p12 = por %p1432_p11, %p1431_p10 }
 0x15e   : > { %p1429_p9 = pneg %p1428_p7 }
 0x160   : > { %p1434_p13 = pnand %p1433_p12, %p1429_p9 }
 0x1cc   : > { %v941_v52 = vpop.f32.mrf.mxu3 }
 0x1cd   : > { %v964_v38 = vsub.f32 %v941_v52, %v960_v35  ;;  %v946_v63 = vrot.slane %v941_v52, 4 }
 0x1cf   : > { %v966_v57 = vmul.f32 %v964_v38, %v964_v38 }
 0x1d1   : > { %v974_v60 = vsel %vm472_vm0, %v966_v57, 0.0 }
 0x1d2   : > { %v975_v61 = vrot.slane %v974_v60, 4 }
 0x1d4   : > { %v976_v56 = vadd.f32 %v975_v61, %v974_v60 }
 0x1d5   : > { %v921_v8 = vpop.f32.mrf.mxu2 }
 0x1d6   : > { %v977_v48 = vrot.slane %v976_v56, 2  ;;  %v947_v7 = vsel %vm472_vm0, %v921_v8, %v946_v63  ;;  %v963_v16 = vsub.f32 %v921_v8, %v959_v3 }
 0x1d7   : > { %949 = vst [vmem:[%s277_s2] sm:$0xff] %v947_v7 }
 0x1d8   : > { %v965_v31 = vmul.f32 %v963_v16, %v963_v16 }
 0x1d9   : > { %1437 = shalt.err (!%p1434_p13)
}
 0x1da   : > { %1312 = dma.vmem_to_hbm [thread:$0]  (%p1601_p4), %s1014_s28, 128, %s1016_s16, %s988_s17   ;;  %v978_v17 = vadd.f32 %v977_v48, %v976_v56  ;;  %v967_v10 = vsel %vm472_vm0, %v965_v31, 0.0 }
 0x1db   : > { %v968_v12 = vrot.slane %v967_v10, 4  ;;  %s1043_s2 = scalar_lea.hbm %s2267_s6, %s1304_s13  ;;  %s2280_s18 = sshll.u32 %s2056_s20, 1 }
 0x1dc   : > { %v979_v19 = vrot.slane %v978_v17, 1  ;;  %s291_s19 = scalar_lea.vmem [#allocation6], %s2280_s18  ;;  %s1047_s28 = sshll.u32 %s1043_s2, 4  ;;  %s1048_s28 = int_to_ptr.hbm [resolvable:$true] %s1047_s28 }
 0x1dd   : > { %v969_v15 = vadd.f32 %v968_v12, %v967_v10  ;;  %s1045_s12 = sshll.u32 %s291_s19, 4  ;;  %s1452_s24 = sshra.s32 %s1048_s28, 4  ;;  %s1046_s12 = int_to_ptr.vmem [resolvable:$true] %s1045_s12  ;;  %s1453_s24 = int_to_ptr.hbm [resolvable:$true] %s1452_s24 }
 0x1de   : > { %v980_v27 = vadd.f32 %v979_v19, %v978_v17  ;;  %s1454_s13 = scalar_lea.hbm %s1453_s24, 2  ;;  %s1458_s17 = scalar_lea.hbm %s2267_s6, 4 }
 0x1df   : > { %v970_v21 = vrot.slane %v969_v15, 2  ;;  %p1455_p0 = scmp.ne.s32.totalorder %s1453_s24, %s1454_s13  ;;  %p1459_p3 = scmp.lt.s32.totalorder %s1453_s24, %s2267_s6 }
 0x1e0   : > { %v983_v26 = vrot.slane %v980_v27, 7  ;;  %p1460_p5 = scmp.lt.s32.totalorder %s1458_s17, %s1454_s13 }
 0x1e1   : > { %v971_v20 = vadd.f32 %v970_v21, %v969_v15  ;;  %p1456_p1 = pnand %p1455_p0, %p1601_p4 }
 0x1e2   : > { %p1461_p6 = por %p1460_p5, %p1459_p3 }
 0x1e3   : > { %v972_v25 = vrot.slane %v971_v20, 1  ;;  %p1457_p2 = pneg %p1456_p1 }
 0x1e5   : > { %v973_v13 = vadd.f32 %v972_v25, %v971_v20  ;;  %p1462_p7 = pnand %p1461_p6, %p1457_p2 }
 0x1e7   : > { %v984_v2 = vsel %vm951_vm2, %v973_v13, %v983_v26 }
 0x1e8   : > { %986 = vst.msk [vmem:[%s291_s19] sm:$0x3] %vm2077_vm4, %v984_v2 }
 0x1e9   : > { %1465 = shalt.err (!%p1462_p7)
}
 0x1ea   : > { %1314 = dma.vmem_to_hbm [thread:$0]  (%p1601_p4), %s1046_s12, 32, %s1048_s28, %s993_s11  }
 0x1eb PF: > { %p1328_p9 = scmp.ge.s32.totalorder %s1520_s26, 2  ;;  %s1059_s30 = sand.u32 1, %s1500_s21  }
 0x1ec   : > { %s1060_s15 = scalar_lea.sflag [#allocation3], %s1059_s30 }
 0x1ed   : > { %p1319_p10 = pnand %p1328_p9, %p1610_p8 }
 0x1ef   : > { %p1320_p11 = pneg %p1319_p10 }
 0x1f1   : > { %1491 = dma.done.wait (%p1320_p11), %s1060_s15, 128  }
 0x1f2   : > { %1493 = vsyncadd (%p1320_p11), %s1060_s15, 4294967168  ;;  %s2281_s1 = sadd.s32 4294967294, %s1520_s26  }
 0x1f3   : > { %s1069_s0 = sand.u32 1, %s2281_s1  }
 0x1f4   : > { %s1070_s2 = scalar_lea.sflag [#allocation5], %s1069_s0 }
 0x1f5   : > { %1495 = dma.done.wait (%p1320_p11), %s1070_s2, 64  }
 0x1f6   : > { %1497 = vsyncadd (%p1320_p11), %s1070_s2, 4294967232  ;;  %s23_s26 = sadd.s32 1, %s1520_s26   ;;  %s2282_s21 = smov %s1504_s22 }
 0x1f7   : > { %p20_p4 = scmp.ge.s32.totalorder %s23_s26, 4   ;;  %s2283_s22 = smov %s1508_s23 }
 0x1f8   : > { %s2284_s23 = smov %s1616_s10  ;;  %s2285_s24 = smov %s1516_s25 }
 0x1f9   : > { %s2286_s25 = smov %s2288_s29  ;;  %22 = sbr.rel (!%p20_p4) target bundleno = 10 (0xa), region = 103 }
 0x1fe   :  { %1086 = vsyncpa [#allocation3], 1 }
 0x1ff   :  { %1088 = vsyncpa [#allocation3 + $0x1], 1 }
 0x200   :  { %1089 = vsyncpa [#allocation5], 1 }
 0x201   :  { %1091 = vsyncpa [#allocation5 + $0x1], 1 }

</bundles_post_ra>
